<compile_context>
chip_gen: v5e
topology: v5e:2x2
jax: 0.10.0
libtpu: 0.0.40
codegen_flags: <defaults>
</compile_context>

<pallas_src>
import jax
import jax.numpy as jnp
import numpy as np
from jax.experimental import pallas as pl
from jax.experimental.pallas import tpu as pltpu

SELU_ALPHA = 1.6732632423543772
SELU_SCALE = 1.0507009873554805

_NEG_BIG = -1e30   # finite "-inf": all-padding tiles can never produce NaNs


def _selu(x):
    return SELU_SCALE * jnp.where(x > 0.0, x, SELU_ALPHA * (jnp.exp(x) - 1.0))


def _chip_vmem_limits():
    """Per-chip scoped-VMEM limit + budget for the fully fused (A resident) path."""
    try:
        info = pltpu.get_tpu_info()
        phys = int(getattr(info, "vmem_capacity_bytes", 64 << 20))
    except Exception:          # interpret mode / CPU / older jax: be conservative
        phys = 64 << 20        # v7x-sized physical VMEM
    limit = min(100 << 20, max(32 << 20, phys - (16 << 20)))
    return limit, limit // 3


def _pick_tile(n, target, align):
    """Largest divisor of n that is a multiple of `align` and <= target."""
    target = max(target, align)
    if n <= target:
        return n
    t = (target // align) * align
    while t >= align:
        if n % t == 0:
            return t
        t -= align
    return n   # unreachable: n is always padded to a multiple of `align`


# ---------------------------------------------------------------------------
# Fused single-pass kernel (small graphs): A is read from HBM exactly once.
# ---------------------------------------------------------------------------
def _fused_kernel(a_ref, xw1_ref, b1_ref, w2_ref, b2_ref, wg_t_ref, bg_ref,
                  pooled_ref):
    a = a_ref[...].astype(jnp.float32)                           # {0,1} exact
    h1 = jnp.dot(a, xw1_ref[...], preferred_element_type=jnp.float32) + b1_ref[...]
    y1 = jnp.dot(h1, w2_ref[...], preferred_element_type=jnp.float32)
    h = _selu(jnp.dot(a, y1, preferred_element_type=jnp.float32) + b2_ref[...])
    # gate_nn(h): lane-1 matmul -> VPU multiply + lane reduce.
    gate = jnp.sum(h * wg_t_ref[...], axis=-1, keepdims=True) + bg_ref[...]
    m = jnp.max(gate, axis=0, keepdims=True)
    p = jnp.exp(gate - m)
    l = jnp.sum(p, axis=0, keepdims=True)
    pooled_ref[...] = jnp.sum(p * h, axis=0, keepdims=True) / l  # exact divide


# ---------------------------------------------------------------------------
# Tiled two-pass path (large graphs).
# ---------------------------------------------------------------------------
def _tiled_pooled(A, xw1, params, wg_t, *, tile_m, tile_k, vmem_limit):
    N, H = xw1.shape
    Np = ((N + 127) // 128) * 128        # pad so aligned 128-divisor tiles exist
    pad = Np - N
    if pad:
        A = jnp.pad(A, ((0, pad), (0, pad)))
        xw1 = jnp.pad(xw1, ((0, pad), (0, 0)))
    a_i8 = A.astype(jnp.int8)            # {0,1}: exact, 4x less HBM than f32

    TM = _pick_tile(Np, tile_m, 128)
    TK = _pick_tile(Np, tile_k, 128)
    CH = min(TK, 512)                    # in-kernel upcast chunk: bounds f32 temp
    n_i, n_k = Np // TM, Np // TK

    cparams = pltpu.CompilerParams(
        dimension_semantics=("parallel", "arbitrary"),
        vmem_limit_bytes=vmem_limit)

    # ---- kernel 1:  y1 = (A @ xW1 + b1) @ W2  (W2 fused into the epilogue) ---
    def conv1_kernel(a_ref, xw1_ref, b1_ref, w2_ref, o_ref):
        k = pl.program_id(1)

        @pl.when(k == 0)
        def _():
            o_ref[...] = jnp.zeros_like(o_ref)

        for c0 in range(0, TK, CH):      # static loop: chunked int8 -> f32 upcast
            ch = min(CH, TK - c0)
            start = pl.multiple_of(k * TK + c0, 128)
            o_ref[...] += jnp.dot(
                a_ref[:, c0:c0 + ch].astype(jnp.float32),
                xw1_ref[pl.ds(start, ch), :],
                preferred_element_type=jnp.float32)

        @pl.when(k == pl.num_programs(1) - 1)
        def _():
            o_ref[...] = jnp.dot(o_ref[...] + b1_ref[...], w2_ref[...],
                                 preferred_element_type=jnp.float32)

    y1 = pl.pallas_call(
        conv1_kernel,
        out_shape=jax.ShapeDtypeStruct((Np, H), jnp.float32),
        grid_spec=pltpu.PrefetchScalarGridSpec(
            num_scalar_prefetch=0,
            grid=(n_i, n_k),
            in_specs=[
                pl.BlockSpec((TM, TK), lambda i, k: (i, k)),   # A    (streamed)
                pl.BlockSpec((Np, H), lambda i, k: (0, 0)),    # xW1  (VMEM-resident)
                pl.BlockSpec((1, H), lambda i, k: (0, 0)),     # b1
                pl.BlockSpec((H, H), lambda i, k: (0, 0)),     # W2
            ],
            out_specs=pl.BlockSpec((TM, H), lambda i, k: (i, 0)),
        ),
        compiler_params=cparams,
    )(a_i8, xw1, params["b1"], params["w2"])

    # ---- kernel 2:  h = selu(A @ y1 + b2); per-row-tile softmax partials -----
    def conv2_pool_kernel(a_ref, y1_ref, b2_ref, wg_t_ref, bg_ref,
                          m_ref, l_ref, pool_ref, agg_ref):
        i = pl.program_id(0)
        k = pl.program_id(1)

        @pl.when(k == 0)
        def _():
            agg_ref[...] = jnp.zeros_like(agg_ref)

        for c0 in range(0, TK, CH):
            ch = min(CH, TK - c0)
            start = pl.multiple_of(k * TK + c0, 128)
            agg_ref[...] += jnp.dot(
                a_ref[:, c0:c0 + ch].astype(jnp.float32),
                y1_ref[pl.ds(start, ch), :],
                preferred_element_type=jnp.float32)

        @pl.when(k == pl.num_programs(1) - 1)
        def _():
            h = _selu(agg_ref[...] + b2_ref[...])                        # (TM, H)
            gate = (jnp.sum(h * wg_t_ref[...], axis=-1, keepdims=True)
                    + bg_ref[...])                                        # (TM, 1)
            # mask rows that only exist because of the padding to Np
            rows = i * TM + jax.lax.broadcasted_iota(jnp.int32, (TM, 1), 0)
            gate = jnp.where(rows < N, gate, _NEG_BIG)
            m_i = jnp.max(gate, axis=0, keepdims=True)                    # (1, 1)
            p = jnp.exp(gate - m_i)                                       # (TM, 1)
            m_ref[...] = m_i.reshape(1, 1, 1)
            l_ref[...] = jnp.sum(p, axis=0, keepdims=True).reshape(1, 1, 1)
            pool_ref[...] = jnp.sum(p * h, axis=0, keepdims=True).reshape(1, 1, H)

    m_p, l_p, pool_p = pl.pallas_call(
        conv2_pool_kernel,
        out_shape=(jax.ShapeDtypeStruct((n_i, 1, 1), jnp.float32),
                   jax.ShapeDtypeStruct((n_i, 1, 1), jnp.float32),
                   jax.ShapeDtypeStruct((n_i, 1, H), jnp.float32)),
        grid_spec=pltpu.PrefetchScalarGridSpec(
            num_scalar_prefetch=0,
            grid=(n_i, n_k),
            in_specs=[
                pl.BlockSpec((TM, TK), lambda i, k: (i, k)),   # A   (streamed)
                pl.BlockSpec((Np, H), lambda i, k: (0, 0)),    # y1  (VMEM-resident)
                pl.BlockSpec((1, H), lambda i, k: (0, 0)),     # b2
                pl.BlockSpec((1, H), lambda i, k: (0, 0)),     # wg^T
                pl.BlockSpec((1, 1), lambda i, k: (0, 0)),     # bg
            ],
            out_specs=(pl.BlockSpec((1, 1, 1), lambda i, k: (i, 0, 0)),
                       pl.BlockSpec((1, 1, 1), lambda i, k: (i, 0, 0)),
                       pl.BlockSpec((1, 1, H), lambda i, k: (i, 0, 0))),
            scratch_shapes=[pltpu.VMEM((TM, H), jnp.float32)],
        ),
        compiler_params=cparams,
    )(a_i8, y1, params["b2"], wg_t, params["bg"])

    # exact log-sum-exp combine of the per-row-tile partials (tiny: n_i x H).
    m_glob = jnp.max(m_p)
    w = jnp.exp(m_p - m_glob)                       # (n_i, 1, 1)
    denom = jnp.sum(w * l_p)
    pooled = jnp.sum(w * pool_p, axis=0) / denom    # (1, H), exact divide
    return pooled


def no_attention_net(A, x, params, *, tile_m=1024, tile_k=2048, force_tiled=False):
    N = A.shape[0]
    H = params["w1"].shape[1]
    vmem_limit, fused_budget = _chip_vmem_limits()

    # DGL GraphConv applies the weight BEFORE aggregation (in_feats <= out_feats):
    # precompute xW1 in JAX (tiny N*C*H op) so both kernels only stream A.
    xw1 = jnp.dot(x, params["w1"])
    wg_t = jnp.transpose(params["wg"])              # (1, H)

    # rough VMEM need of the fused path: int8 A + one f32 upcast + (N, H) temps
    fused_bytes = N * N * 5 + 6 * N * H * 4
    if (not force_tiled) and fused_bytes <= fused_budget:
        pooled = pl.pallas_call(
            _fused_kernel,
            out_shape=jax.ShapeDtypeStruct((1, H), jnp.float32),
            compiler_params=pltpu.CompilerParams(vmem_limit_bytes=vmem_limit),
        )(A.astype(jnp.int8), xw1, params["b1"], params["w2"], params["b2"],
          wg_t, params["bg"])
    else:
        pooled = _tiled_pooled(A, xw1, params, wg_t, tile_m=tile_m,
                               tile_k=tile_k, vmem_limit=vmem_limit)

    # MLP head: (1, H) @ (H, H/2) @ (H/2, 1) -- negligible, plain JAX.
    y = _selu(jnp.dot(pooled, params["wf1"]) + params["bf1"])
    return jax.nn.sigmoid(jnp.dot(y, params["wf2"]) + params["bf2"])


# ---------------------------------------------------------------------------
# Parameters / reference / test
# ---------------------------------------------------------------------------
def _uniform(key, shape, fan_in):
    bound = 1.0 / float(np.sqrt(fan_in))
    return jax.random.uniform(key, shape, jnp.float32, -bound, bound)


def init_params(key, in_channels, n_hidden):
    ks = jax.random.split(key, 10)
    h2 = n_hidden // 2
    return {
        "w1": _uniform(ks[0], (in_channels, n_hidden), in_channels),
        "b1": _uniform(ks[1], (1, n_hidden), in_channels),
        "w2": _uniform(ks[2], (n_hidden, n_hidden), n_hidden),
        "b2": _uniform(ks[3], (1, n_hidden), n_hidden),
        "wg": _uniform(ks[4], (n_hidden, 1), n_hidden),     # pooling_gate
        "bg": _uniform(ks[5], (1, 1), n_hidden),
        "wf1": _uniform(ks[6], (n_hidden, h2), n_hidden),   # fc1
        "bf1": _uniform(ks[7], (1, h2), n_hidden),
        "wf2": _uniform(ks[8], (h2, 1), h2),                # fc2
        "bf2": _uniform(ks[9], (1, 1), h2),
    }


def reference(A, x, p):
    h1 = A @ (x @ p["w1"]) + p["b1"]
    h = _selu(A @ (h1 @ p["w2"]) + p["b2"])
    gate = h @ p["wg"] + p["bg"]
    alpha = jax.nn.softmax(gate, axis=0)
    pooled = jnp.sum(alpha * h, axis=0, keepdims=True)
    y = _selu(pooled @ p["wf1"] + p["bf1"])
    return jax.nn.sigmoid(y @ p["wf2"] + p["bf2"])


def _make_case(key, n_nodes, in_channels, n_hidden, p_edge):
    k_graph, k_feat, k_params = jax.random.split(key, 3)
    adj = jax.random.bernoulli(k_graph, p_edge, (n_nodes, n_nodes)).astype(jnp.float32)
    A = jnp.maximum(adj, jnp.eye(n_nodes, dtype=jnp.float32))    # A[dst, src] + self-loops
    x = jax.random.normal(k_feat, (n_nodes, in_channels), jnp.float32)
    params = init_params(k_params, in_channels, n_hidden)
    return A, x, params


if __name__ == "__main__":
    key = jax.random.PRNGKey(0)
    k0, k1, k2 = jax.random.split(key, 3)

    # 1) small graph -> fully fused single-pass kernel (A read from HBM once).
    A, x, params = _make_case(k0, 16, 8, 32, 0.3)
    out = jax.block_until_ready(no_attention_net(A, x, params))
    np.testing.assert_allclose(np.asarray(out), np.asarray(reference(A, x, params)),
                               rtol=2e-5, atol=2e-5)

    # 2) larger graph, forced tiled path: multi-tile grid + per-tile softmax partials.
    A, x, params = _make_case(k1, 384, 8, 32, 0.03)
    out = jax.block_until_ready(
        no_attention_net(A, x, params, force_tiled=True, tile_m=128, tile_k=128))
    np.testing.assert_allclose(np.asarray(out), np.asarray(reference(A, x, params)),
                               rtol=2e-5, atol=2e-5)

    # 3) non-aligned node count: exercises padding + row masking in the tiled path.
    A, x, params = _make_case(k2, 200, 8, 32, 0.03)
    out = jax.block_until_ready(
        no_attention_net(A, x, params, force_tiled=True, tile_m=128, tile_k=128))
    np.testing.assert_allclose(np.asarray(out), np.asarray(reference(A, x, params)),
                               rtol=2e-5, atol=2e-5)

    print("KERNEL_OK")
</pallas_src>

<mosaic_0001>
module attributes {stable_mosaic.version = 11 : i64} {
  func.func @_fused_kernel(%arg0: memref<16x16xi8, #tpu.memory_space<vmem>>, %arg1: memref<16x32xf32, #tpu.memory_space<vmem>>, %arg2: memref<1x32xf32, #tpu.memory_space<vmem>>, %arg3: memref<32x32xf32, #tpu.memory_space<vmem>>, %arg4: memref<1x32xf32, #tpu.memory_space<vmem>>, %arg5: memref<1x32xf32, #tpu.memory_space<vmem>>, %arg6: memref<1x1xf32, #tpu.memory_space<vmem>>, %arg7: memref<1x32xf32, #tpu.memory_space<vmem>>) attributes {dimension_semantics = [], scalar_prefetch = 0 : i64, scratch_operands = 0 : i64, tpu.core_type = #tpu.core_type<tc>} {
    %c0 = arith.constant 0 : index
    %c0_0 = arith.constant 0 : index
    %0 = vector.load %arg0[%c0, %c0_0] : memref<16x16xi8, #tpu.memory_space<vmem>>, vector<16x16xi8>
    %1 = arith.sitofp %0 : vector<16x16xi8> to vector<16x16xf32>
    %c0_1 = arith.constant 0 : index
    %c0_2 = arith.constant 0 : index
    %2 = vector.load %arg1[%c0_1, %c0_2] : memref<16x32xf32, #tpu.memory_space<vmem>>, vector<16x32xf32>
    %cst = arith.constant dense<0.000000e+00> : vector<16x32xf32>
    %3 = tpu.matmul %1, %2, %cst {dimension_numbers = #tpu.dot_dimension_numbers<[1], [0], [0], [1], [0, 0, 1, 1], [], []>} : vector<16x16xf32>, vector<16x32xf32>, vector<16x32xf32> -> vector<16x32xf32>
    %c0_3 = arith.constant 0 : index
    %c0_4 = arith.constant 0 : index
    %4 = vector.load %arg2[%c0_3, %c0_4] : memref<1x32xf32, #tpu.memory_space<vmem>>, vector<1x32xf32>
    %5 = vector.broadcast %4 : vector<1x32xf32> to vector<16x32xf32>
    %6 = arith.addf %3, %5 : vector<16x32xf32>
    %c0_5 = arith.constant 0 : index
    %c0_6 = arith.constant 0 : index
    %7 = vector.load %arg3[%c0_5, %c0_6] : memref<32x32xf32, #tpu.memory_space<vmem>>, vector<32x32xf32>
    %cst_7 = arith.constant dense<0.000000e+00> : vector<16x32xf32>
    %8 = tpu.matmul %6, %7, %cst_7 {dimension_numbers = #tpu.dot_dimension_numbers<[1], [0], [0], [1], [0, 0, 1, 1], [], []>} : vector<16x32xf32>, vector<32x32xf32>, vector<16x32xf32> -> vector<16x32xf32>
    %cst_8 = arith.constant dense<0.000000e+00> : vector<16x32xf32>
    %9 = tpu.matmul %1, %8, %cst_8 {dimension_numbers = #tpu.dot_dimension_numbers<[1], [0], [0], [1], [0, 0, 1, 1], [], []>} : vector<16x16xf32>, vector<16x32xf32>, vector<16x32xf32> -> vector<16x32xf32>
    %c0_9 = arith.constant 0 : index
    %c0_10 = arith.constant 0 : index
    %10 = vector.load %arg4[%c0_9, %c0_10] : memref<1x32xf32, #tpu.memory_space<vmem>>, vector<1x32xf32>
    %11 = vector.broadcast %10 : vector<1x32xf32> to vector<16x32xf32>
    %12 = arith.addf %9, %11 : vector<16x32xf32>
    %cst_11 = arith.constant 0.000000e+00 : f32
    %13 = vector.broadcast %cst_11 : f32 to vector<16x32xf32>
    %14 = arith.cmpf ogt, %12, %13 : vector<16x32xf32>
    %15 = math.exp %12 : vector<16x32xf32>
    %cst_12 = arith.constant 1.000000e+00 : f32
    %16 = vector.broadcast %cst_12 : f32 to vector<16x32xf32>
    %17 = arith.subf %15, %16 : vector<16x32xf32>
    %cst_13 = arith.constant 1.67326319 : f32
    %18 = vector.broadcast %cst_13 : f32 to vector<16x32xf32>
    %19 = arith.mulf %18, %17 : vector<16x32xf32>
    %20 = arith.select %14, %12, %19 : vector<16x32xi1>, vector<16x32xf32>
    %cst_14 = arith.constant 1.05070102 : f32
    %21 = vector.broadcast %cst_14 : f32 to vector<16x32xf32>
    %22 = arith.mulf %21, %20 : vector<16x32xf32>
    %c0_15 = arith.constant 0 : index
    %c0_16 = arith.constant 0 : index
    %23 = vector.load %arg5[%c0_15, %c0_16] : memref<1x32xf32, #tpu.memory_space<vmem>>, vector<1x32xf32>
    %24 = vector.broadcast %23 : vector<1x32xf32> to vector<16x32xf32>
    %25 = arith.mulf %22, %24 : vector<16x32xf32>
    %cst_17 = arith.constant dense<0.000000e+00> : vector<16xf32>
    %26 = vector.multi_reduction <add>, %25, %cst_17 [1] : vector<16x32xf32> to vector<16xf32>
    %27 = vector.shape_cast %26 : vector<16xf32> to vector<16x1xf32>
    %c0_18 = arith.constant 0 : index
    %c0_19 = arith.constant 0 : index
    %28 = vector.load %arg6[%c0_18, %c0_19] : memref<1x1xf32, #tpu.memory_space<vmem>>, vector<1x1xf32>
    %29 = vector.broadcast %28 : vector<1x1xf32> to vector<16x1xf32>
    %30 = arith.addf %27, %29 : vector<16x1xf32>
    %cst_20 = arith.constant dense<0xFF800000> : vector<1xf32>
    %31 = vector.multi_reduction <maximumf>, %30, %cst_20 [0] : vector<16x1xf32> to vector<1xf32>
    %32 = vector.shape_cast %31 : vector<1xf32> to vector<1x1xf32>
    %33 = vector.broadcast %32 : vector<1x1xf32> to vector<16x1xf32>
    %34 = arith.subf %30, %33 : vector<16x1xf32>
    %35 = math.exp %34 : vector<16x1xf32>
    %cst_21 = arith.constant dense<0.000000e+00> : vector<1xf32>
    %36 = vector.multi_reduction <add>, %35, %cst_21 [0] : vector<16x1xf32> to vector<1xf32>
    %37 = vector.shape_cast %36 : vector<1xf32> to vector<1x1xf32>
    %38 = vector.broadcast %35 : vector<16x1xf32> to vector<16x32xf32>
    %39 = arith.mulf %38, %22 : vector<16x32xf32>
    %cst_22 = arith.constant dense<0.000000e+00> : vector<32xf32>
    %40 = vector.multi_reduction <add>, %39, %cst_22 [0] : vector<16x32xf32> to vector<32xf32>
    %41 = vector.shape_cast %40 : vector<32xf32> to vector<1x32xf32>
    %42 = vector.broadcast %37 : vector<1x1xf32> to vector<1x32xf32>
    %43 = arith.divf %41, %42 : vector<1x32xf32>
    %c0_23 = arith.constant 0 : index
    %c0_24 = arith.constant 0 : index
    %44 = vector.load %arg7[%c0_23, %c0_24] : memref<1x32xf32, #tpu.memory_space<vmem>>, vector<1x32xf32>
    tpu.vector_store %arg7[%c0_23, %c0_24], %43 {strides = array<i32>} : memref<1x32xf32, #tpu.memory_space<vmem>>, vector<1x32xf32>,
    return
  }
}

</mosaic_0001>

<bundles_post_ra>
// kernel: tpu_custom_call.1
= control target key start
LH: loop header
LB: loop body
LE: loop exit
PB: predicated region body
PF: predicated region fallthrough
CT: control target
= control target key end

     0   :  { %s528_s0 = inlined_call_operand.hbm [shape: s8[16,16], index: 0, kind: input, shape index: {}]   ;;  %s529_s1 = inlined_call_operand.hbm [shape: f32[16,32], index: 1, kind: input, shape index: {}]   ;;  %s530_s2 = inlined_call_operand.vmem [shape: f32[1,32], index: 2, kind: input, shape index: {}]   ;;  %s531_s3 = inlined_call_operand.hbm [shape: f32[32,32], index: 3, kind: input, shape index: {}]   ;;  %s532_s4 = inlined_call_operand.vmem [shape: f32[1,32], index: 4, kind: input, shape index: {}]   ;;  %s533_s5 = inlined_call_operand.vmem [shape: f32[1,32], index: 5, kind: input, shape index: {}]   ;;  %s534_s6 = inlined_call_operand.<no memory space> [shape: f32[1,1], index: 6, kind: input, shape index: {}]   ;;  %s535_s7 = inlined_call_operand.hbm [shape: f32[1,32], index: 7, kind: output, shape index: {}]  }
   0x1   :  { %v12_v0 = vstv %s534_s6 }
   0x2   :  { %13 = vst [vmem:[#allocation2] sm:$0x1] %v12_v0 }
   0x3   :  { %14 = vsyncpa [#allocation4], 0 }
   0x4   :  { %15 = vsyncpa [#allocation7], 0  ;;  %s34_s28 = sshll.u32 %s529_s1, 4  ;;  %s35_s28 = int_to_ptr.hbm [resolvable:$true] %s34_s28 }
   0x5   :  { %16 = vsyncpa [#allocation5], 0  ;;  %s441_s29 = smov [#allocation6]   ;;  %s21_s10 = sshll.u32 %s528_s0, 4  ;;  %s22_s10 = int_to_ptr.hbm [resolvable:$true] %s21_s10 }
   0x6   :  { %s36_s30 = sshll.u32 %s441_s29, 4  ;;  %s442_s11 = smov 128   ;;  %s37_s30 = int_to_ptr.vmem [resolvable:$true] %s36_s30 }
   0x7   :  { %s443_s12 = smov 8   ;;  %s444_s6 = smov [#allocation3]  }
   0x8   :  { %42 = dma.hbm_to_vmem [thread:$0]  %s35_s28, 256, %s37_s30, [#allocation7], %s442_s11, %s442_s11, %s443_s12  }
   0x9   :  { %s23_s13 = sshll.u32 %s444_s6, 4  ;;  %s445_s14 = smov 32   ;;  %s24_s13 = int_to_ptr.vmem [resolvable:$true] %s23_s13 }
   0xa   :  { %s446_s15 = smov 2   ;;  %s49_s17 = sshll.u32 %s531_s3, 4  ;;  %s50_s17 = int_to_ptr.hbm [resolvable:$true] %s49_s17 }
   0xb   :  { %29 = dma.hbm_to_vmem [thread:$0]  %s22_s10, 64, %s24_s13, [#allocation4], %s445_s14, %s445_s14, %s446_s15  }
   0xc   :  { %s447_s18 = smov [#allocation8]  }
   0xd   :  { %s51_s19 = sshll.u32 %s447_s18, 4  ;;  %s52_s19 = int_to_ptr.vmem [resolvable:$true] %s51_s19 }
   0xe   :  { %57 = dma.hbm_to_vmem [thread:$0]  %s50_s17, 512, %s52_s19, [#allocation7], %s442_s11, %s442_s11, %s443_s12  }
   0xf   :  { %435 = dma.done.wait [#allocation4], 64  }
  0x10   :  { %436 = vsyncadd [#allocation4], 4294967232 }
  0x11   :  { %437 = dma.done.wait [#allocation7], 768  }
  0x12   :  { %438 = vsyncadd [#allocation7], 4294966528  ;;  %v83_v1 = vld [vmem:[#allocation6 + $0x8] sm:$0xff]  ;;  %v82_v2 = vld [vmem:[#allocation6] sm:$0xff]  ;;  %vm88_vm0 = vcmask 130048   ;;  %vm122_vm1 = vcmask 261120  }
  0x13   :  { %v306_v3 = vld [vmem:[#allocation3] sm:$0xf]   ;;  %109 = vmatpush.msra.mxu0 %v83_v1  ;;  %v121_v5 = vld [vmem:[#allocation8 + $0x18] sm:$0xff]  ;;  %v120_v6 = vld [vmem:[#allocation8 + $0x10] sm:$0xff]  ;;  %v448_v41 = vmov 0   ;;  %vm211_vm4 = vcmask 7168  }
  0x14   :  { %v307_v4 = vunpack.c.0.s8 %v306_v3  ;;  %141 = vmatpush.msra.mxu1 %v121_v5  ;;  %309 = vmatpush.msra.mxu3 %v121_v5  ;;  %v308_v8 = vunpack.c.1.s8 %v306_v3  ;;  %v119_v10 = vld [vmem:[#allocation8 + $0x8] sm:$0xff]  ;;  %v118_v11 = vld [vmem:[#allocation8] sm:$0xff]  ;;  %s286_s25 = sshll.u32 %s535_s7, 4  ;;  %vm277_vm9 = vcmask 253952   ;;  %s287_s25 = int_to_ptr.hbm [resolvable:$true] %s286_s25 }
  0x15   :  { %110 = vmatpush.msra.mxu0 %v82_v2  ;;  %v325_v12 = vld [vmem:[%s530_s2] ss:$0 sm:$0xff]  ;;  %322 = vset.pattern.permute.xlu1 %v448_v41 }
  0x16   :  { %v80_v7 = vcvt.s32.f32 %v307_v4  ;;  %142 = vmatpush.msra.mxu1 %v120_v6  ;;  %310 = vmatpush.msra.mxu3 %v120_v6  ;;  %v81_v9 = vcvt.s32.f32 %v308_v8  ;;  %v326_v19 = vld [vmem:[%s532_s4] ss:$0 sm:$0xff]  ;;  %s449_s4 = smov [#allocation9]  }
  0x17   :  { %v327_v29 = vld [vmem:[%s533_s5] ss:$0 sm:$0xff]  ;;  %323 = vset.pattern.permute.xlu2 %v448_v41  ;;  %324 = vset.pattern.permute.xlu0 %v448_v41  ;;  %s284_s5 = sshll.u32 %s449_s4, 4  ;;  %s285_s5 = int_to_ptr.vmem [resolvable:$true] %s284_s5 }
  0x18   :  { %297 = vmatmul.msk.f32.vlgmr.msra.gmra.mxu0 %vm88_vm0, %v80_v7  ;;  %143 = vmatpush.msra.mxu1 %v119_v10  ;;  %v328_v43 = vld [vmem:[#allocation2] ss:$0 sm:$0xff] }
  0x19   :  { %311 = vmatpush.msra.mxu3 %v119_v10 }
  0x1a   :  { %144 = vmatpush.msra.mxu1 %v118_v11 }
  0x1b   :  { %312 = vmatpush.msra.mxu3 %v118_v11 }
  0x20   :  { %298 = vmatmul.msk.f32.gmra.mxu0 %vm88_vm0, %v81_v9 }
  0x95   :  { %v112_v13 = vpop.f32.mrf.mxu0 }
  0x96   :  { %v113_v14 = vadd.f32 %v325_v12, %v112_v13 }
  0x98   :  { %299 = vmatmul.msk.f32.vlgmr.msra.gmra.mxu1 %vm122_vm1, %v113_v14 }
  0x9d   :  { %v115_v15 = vpop.f32.mrf.mxu0 }
  0x9e   :  { %v116_v16 = vadd.f32 %v325_v12, %v115_v15 }
  0xa0   :  { %300 = vmatmul.msk.f32.vlgmr.msra.gmra.mxu3 %vm122_vm1, %v116_v16 }
 0x115   :  { %v146_v18 = vpop.f32.mrf.mxu1 }
 0x123   :  { %v149_v17 = vpop.f32.mrf.mxu3 }
 0x124   :  { %170 = vmatpush.msra.mxu2 %v149_v17 }
 0x126   :  { %171 = vmatpush.msra.mxu2 %v146_v18 }
 0x127   :  { %301 = vmatmul.msk.f32.vlgmr.msra.gmra.mxu2 %vm88_vm0, %v80_v7 }
 0x12f   :  { %302 = vmatmul.msk.f32.gmra.mxu2 %vm88_vm0, %v81_v9 }
 0x1aa   :  { %v173_v20 = vpop.f32.mrf.mxu2 }
 0x1ab   :  { %v174_v21 = vadd.f32 %v326_v19, %v173_v20 }
 0x1ad   :  { %v181_v22 = vmul.f32 1.442695, %v174_v21  ;;  %vm179_vm2 = vcmp.gt.f32.partialorder %v174_v21, 0.0 }
 0x1af   :  { %329 = vpow2.f32 %v181_v22 }
 0x1b2   :  { %v176_v23 = vpop.f32.mrf.mxu2 }
 0x1b3   :  { %v177_v24 = vadd.f32 %v326_v19, %v176_v23 }
 0x1b5   :  { %v330_v25 = vpop.eup %329  ;;  %v183_v26 = vmul.f32 1.442695, %v177_v24  ;;  %vm180_vm3 = vcmp.gt.f32.partialorder %v177_v24, 0.0 }
 0x1b6   :  { %v303_v27 = vadd.f32 -1.0, %v330_v25 }
 0x1b7   :  { %331 = vpow2.f32 %v183_v26 }
 0x1b8   :  { %v187_v28 = vmul.f32 1.6732632, %v303_v27 }
 0x1ba   :  { %v189_v30 = vsel %vm179_vm2, %v174_v21, %v187_v28 }
 0x1bb   :  { %v191_v31 = vmul.f32 1.050701, %v189_v30 }
 0x1bd   :  { %v332_v32 = vpop.eup %331  ;;  %v197_v33 = vmul.f32 %v327_v29, %v191_v31 }
 0x1be   :  { %v304_v34 = vadd.f32 -1.0, %v332_v32 }
 0x1bf   :  { %v199_v35 = vsel %vm122_vm1, %v197_v33, 0.0 }
 0x1c0   :  { %v188_v36 = vmul.f32 1.6732632, %v304_v34  ;;  %200 = vadd.xlane.f32.xlu0 %v199_v35 }
 0x1c2   :  { %v190_v37 = vsel %vm180_vm3, %v177_v24, %v188_v36 }
 0x1c3   :  { %v192_v38 = vmul.f32 1.050701, %v190_v37 }
 0x1c5   :  { %v198_v39 = vmul.f32 %v327_v29, %v192_v38 }
 0x1c7   :  { %v202_v40 = vsel %vm122_vm1, %v198_v39, 0.0 }
 0x1c8   :  { %203 = vadd.xlane.f32.xlu0 %v202_v40 }
 0x233   :  { %v201_v42 = vpop.xlane.xlu0 %200 }
 0x234   :  { %v209_v44 = vadd.f32 %v328_v43, %v201_v42 }
 0x236   :  { %v212_v47 = vsel %vm211_vm4, %v209_v44, -inf }
 0x23b   :  { %v204_v45 = vpop.xlane.xlu0 %203 }
 0x23c   :  { %v210_v46 = vadd.f32 %v328_v43, %v204_v45 }
 0x23e   :  { %v213_v48 = vsel %vm211_vm4, %v210_v46, -inf }
 0x23f   :  { %v214_v49 = vmax.f32 %v212_v47, %v213_v48 }
 0x241   :  { %v215_v50 = vrot.slane %v214_v49, 4 }
 0x243   :  { %v216_v51 = vmax.f32 %v214_v49, %v215_v50 }
 0x245   :  { %v217_v52 = vrot.slane %v216_v51, 2 }
 0x247   :  { %v218_v53 = vmax.f32 %v216_v51, %v217_v52 }
 0x249   :  { %v219_v54 = vrot.slane %v218_v53, 1 }
 0x24b   :  { %v220_v55 = vmax.f32 %v218_v53, %v219_v54 }
 0x24d   :  { %v221_v56 = vsub.f32 %v209_v44, %v220_v55  ;;  %v222_v57 = vsub.f32 %v210_v46, %v220_v55 }
 0x24f   :  { %v225_v58 = vmul.f32 1.442695, %v222_v57  ;;  %v223_v59 = vmul.f32 1.442695, %v221_v56 }
 0x251   :  { %333 = vpow2.f32 %v225_v58 }
 0x252   :  { %335 = vpow2.f32 %v223_v59 }
 0x257   :  { %v334_v60 = vpop.eup %333 }
 0x258   :  { %v336_v61 = vpop.eup %335  ;;  %v228_v62 = vsel %vm211_vm4, %v334_v60, 0.0 }
 0x259   :  { %238 = vperm.xlu1 %322, %v336_v61   ;;  %v227_v63 = vsel %vm211_vm4, %v336_v61, 0.0 }
 0x25a   :  { %v229_v0 = vadd.f32 %v228_v62, %v227_v63 }
 0x25c   :  { %v230_v1 = vrot.slane %v229_v0, 4 }
 0x25e   :  { %v231_v2 = vadd.f32 %v230_v1, %v229_v0 }
 0x260   :  { %v232_v3 = vrot.slane %v231_v2, 2 }
 0x261   :  { %243 = vperm.xlu1 %322, %v334_v60  }
 0x262   :  { %v233_v4 = vadd.f32 %v232_v3, %v231_v2 }
 0x264   :  { %v234_v5 = vrot.slane %v233_v4, 1 }
 0x266   :  { %v235_v6 = vadd.f32 %v234_v5, %v233_v4 }
 0x268   :  { %259 = vperm.xlu2 %323, %v235_v6  }
 0x2c2   :  { %v260_v7 = vpop.permute.xlu2 %259 }
 0x2c3   :  { %337 = vrcp.f32 %v260_v7  ;;  %v273_v23 = vand.u32 2147483648, %v260_v7  ;;  %vm267_vm6 = vweird.f32 %v260_v7  ;;  %v271_v24 = vand.u32 2147483647, %v260_v7 }
 0x2c5   :  { %v274_v28 = vor.u32 1.1754944e-38, %v273_v23  ;;  %vm272_vm8 = vcmp.eq.f32.partialorder %v271_v24, 8.507059e+37 }
 0x2c9   :  { %v338_v9 = vpop.eup %337 }
 0x2ca   :  { %v263_v10 = vmul.f32 %v338_v9, %v260_v7  ;;  %vm268_vm5 = vweird.f32 %v338_v9 }
 0x2cb   :  { %v239_v8 = vpop.permute.xlu1 %238  ;;  %vm269_vm7 = vmor %vm267_vm6, %vm268_vm5 }
 0x2cc   :  { %v246_v11 = vmul.f32 %v239_v8, %v191_v31  ;;  %v264_v14 = vsub.f32 1.0, %v263_v10 }
 0x2ce   :  { %v248_v15 = vsel %vm122_vm1, %v246_v11, 0.0  ;;  %v265_v18 = vmul.f32 %v338_v9, %v264_v14 }
 0x2d0   :  { %v266_v21 = vadd.f32 %v338_v9, %v265_v18 }
 0x2d2   :  { %v270_v26 = vsel %vm269_vm7, %v338_v9, %v266_v21 }
 0x2d3   :  { %v244_v12 = vpop.permute.xlu1 %243  ;;  %v275_v30 = vsel %vm272_vm8, %v274_v28, %v270_v26 }
 0x2d4   :  { %v247_v13 = vmul.f32 %v244_v12, %v192_v38 }
 0x2d6   :  { %v249_v16 = vsel %vm122_vm1, %v247_v13, 0.0 }
 0x2d7   :  { %v250_v17 = vadd.f32 %v249_v16, %v248_v15 }
 0x2d9   :  { %v251_v19 = vrot.slane %v250_v17, 4 }
 0x2db   :  { %v252_v20 = vadd.f32 %v251_v19, %v250_v17 }
 0x2dd   :  { %v253_v22 = vrot.slane %v252_v20, 2 }
 0x2df   :  { %v254_v25 = vadd.f32 %v253_v22, %v252_v20 }
 0x2e1   :  { %v255_v27 = vrot.slane %v254_v25, 1 }
 0x2e3   :  { %v256_v29 = vadd.f32 %v255_v27, %v254_v25 }
 0x2e5   :  { %v276_v31 = vmul.f32 %v275_v30, %v256_v29 }
 0x2e7   :  { %278 = vst.msk [vmem:[#allocation9] sm:$0x1] %vm277_vm9, %v276_v31 }
 0x2e8   :  { %289 = dma.vmem_to_hbm [thread:$0]  %s285_s5, 16, %s287_s25, [#allocation5]  }
 0x2e9   :  { %439 = dma.done.wait [#allocation5], 16  }
 0x2ea   :  { %440 = vsyncadd [#allocation5], 4294967280 }
 0x2eb   :  { %294 = vsyncpa [#allocation4], 1 }
 0x2ec   :  { %295 = vsyncpa [#allocation7], 1 }
 0x2ed   :  { %296 = vsyncpa [#allocation5], 1 }

</bundles_post_ra>
